<compile_context>
chip_gen: v5e
topology: v5e:2x2
jax: 0.10.0
libtpu: 0.0.40
codegen_flags: <defaults>
</compile_context>

<pallas_src>
import jax
import jax.numpy as jnp
from jax.experimental import pallas as pl
from jax.experimental.pallas import tpu as pltpu


def make_seq_cnn_kernel(filter_sizes, seq_len, max_pad, emb_dim, out_ch, b_tile):
    nf = len(filter_sizes)

    def kernel(*refs):
        x_ref = refs[0]                       # (Bt, seq + 2*max_pad, E)   bf16
        conv_w = refs[1:1 + nf]               # each (fh_i*E, out_ch)      bf16 (im2col)
        conv_b = refs[1 + nf:1 + 2 * nf]      # each (1, out_ch)           f32
        lin_w_ref = refs[1 + 2 * nf]          # (out_ch*nf, n_class)       bf16
        lin_b_ref = refs[2 + 2 * nf]          # (1, n_class)               f32
        out_ref = refs[3 + 2 * nf]            # (Bt, n_class)              f32

        # Load each batch row of the tile once; everything below is static slicing.
        x_rows = [x_ref[b] for b in range(b_tile)]        # each (S+2P, E)

        feats = []
        for i, fh in enumerate(filter_sizes):
            off = max_pad - (fh - 1)          # where this filter's own padding starts
            out_len = seq_len + fh - 1        # conv output length (padding = fh-1 both sides)

            # im2col for the whole batch tile:
            #   per batch: concat the fh time-shifted views along lanes -> (out_len, fh*E)
            #   then stack batches along sublanes            -> (Bt*out_len, fh*E)
            rows = []
            for b in range(b_tile):
                taps = [x_rows[b][off + dh: off + dh + out_len, :] for dh in range(fh)]
                rows.append(jnp.concatenate(taps, axis=-1))
            lhs = jnp.concatenate(rows, axis=0)            # (Bt*out_len, fh*E) bf16

            # One MXU matmul per filter for the whole batch tile (f32 accumulation).
            acc = jnp.dot(lhs, conv_w[i][...],
                          preferred_element_type=jnp.float32)   # (Bt*out_len, oc)

            # max_pool1d over the full time axis, per batch (static segmented max).
            pooled = jnp.concatenate(
                [jnp.max(acc[b * out_len:(b + 1) * out_len, :], axis=0, keepdims=True)
                 for b in range(b_tile)], axis=0)               # (Bt, oc)

            # Bias + ReLU commute with the max over time, so apply them to (Bt, oc) only.
            pooled = jnp.maximum(pooled + conv_b[i][...], 0.0)
            # LocalResponseNorm(size=1, alpha=1, beta=1/2, k=1): a / sqrt(1 + a^2)
            pooled = pooled * jax.lax.rsqrt(1.0 + pooled * pooled)
            feats.append(pooled)

        # Linear on the concatenated features: one matmul for the whole tile, one store.
        feat = jnp.concatenate(feats, axis=-1).astype(lin_w_ref.dtype)   # (Bt, nf*oc)
        logits = jnp.dot(feat, lin_w_ref[...],
                         preferred_element_type=jnp.float32) + lin_b_ref[...]
        out_ref[...] = logits.astype(out_ref.dtype)

    return kernel


def seq_cnn_forward(tokens, emb_table, conv_ws, conv_bs, lin_w, lin_b, filter_sizes):
    """tokens: (seq_len, batch) int32 (matches PyTorch input[0] layout)."""
    filter_sizes = tuple(filter_sizes)
    seq_len, batch = tokens.shape
    emb_dim = emb_table.shape[1]
    out_ch = conv_bs[0].shape[1]
    n_class = lin_w.shape[1]
    nf = len(filter_sizes)
    max_pad = max(filter_sizes) - 1
    s_tot = seq_len + 2 * max_pad

    # Batch tile: full batch when small; otherwise a multiple-of-8 tile (sublane rule for
    # the partial (B_tile, n_class) output block).  Raise b_tile (multiple of 8) against the
    # per-generation VMEM budget (v7x has 64 MiB physical) for bigger problems.
    if batch <= 8:
        b_tile = batch
    else:
        b_tile = 8
    b_pad = pl.cdiv(batch, b_tile) * b_tile
    if b_pad != batch:
        tokens = jnp.pad(tokens, ((0, 0), (0, b_pad - batch)))

    # JAX glue outside the kernel: embedding lookup, transpose(0,1), unified padding, bf16.
    x = jnp.take(emb_table, tokens, axis=0)                 # (S, Bp, E)
    x = jnp.transpose(x, (1, 0, 2))                         # (Bp, S, E)
    xp = jnp.pad(x, ((0, 0), (max_pad, max_pad), (0, 0)))   # (Bp, S+2P, E)
    xp = xp.astype(jnp.bfloat16)

    # im2col weight layout: (fh, E, oc) -> (fh*E, oc), bf16 MXU inputs; biases stay f32.
    conv_w_r = [w.reshape(w.shape[0] * w.shape[1], w.shape[2]).astype(jnp.bfloat16)
                for w in conv_ws]
    conv_b_r = [b.astype(jnp.float32) for b in conv_bs]
    lin_w_bf = lin_w.astype(jnp.bfloat16)
    lin_b_f = lin_b.astype(jnp.float32)

    grid = (b_pad // b_tile,)
    in_specs = [pl.BlockSpec((b_tile, s_tot, emb_dim), lambda i: (i, 0, 0))]
    for w in conv_w_r:
        in_specs.append(pl.BlockSpec(w.shape, lambda i: (0, 0)))
    for bia in conv_b_r:
        in_specs.append(pl.BlockSpec(bia.shape, lambda i: (0, 0)))
    in_specs.append(pl.BlockSpec(lin_w_bf.shape, lambda i: (0, 0)))
    in_specs.append(pl.BlockSpec(lin_b_f.shape, lambda i: (0, 0)))
    out_spec = pl.BlockSpec((b_tile, n_class), lambda i: (i, 0))

    # Advisory cost estimate for XLA scheduling around the custom call.
    flops = sum(2 * b_pad * (seq_len + fh - 1) * fh * emb_dim * out_ch
                for fh in filter_sizes)
    flops += 2 * b_pad * nf * out_ch * n_class
    bytes_accessed = (xp.size * 2 + sum(w.size * 2 for w in conv_w_r)
                      + sum(b.size * 4 for b in conv_b_r)
                      + lin_w_bf.size * 2 + lin_b_f.size * 4 + b_pad * n_class * 4)
    cost = pl.CostEstimate(flops=int(flops), transcendentals=int(b_pad * nf * out_ch),
                           bytes_accessed=int(bytes_accessed))

    # Explicit VMEM budget: double-buffered x tile + weights + im2col / accumulator
    # intermediates, with 2x headroom, capped below v7x's 64 MiB physical VMEM.
    max_fh = max(filter_sizes)
    vmem_need = 2 * (b_tile * s_tot * emb_dim * 2)                       # x (double-buffered)
    vmem_need += sum(w.size * 2 for w in conv_w_r) + lin_w_bf.size * 2   # weights
    vmem_need += b_tile * (seq_len + max_fh - 1) * (max_fh * emb_dim) * 2  # im2col LHS
    vmem_need += b_tile * (seq_len + max_fh - 1) * out_ch * 4              # f32 acc
    vmem_limit = int(min(max(2 * vmem_need, 8 << 20), 48 << 20))

    kernel = make_seq_cnn_kernel(filter_sizes, seq_len, max_pad, emb_dim, out_ch, b_tile)
    out = pl.pallas_call(
        kernel,
        out_shape=jax.ShapeDtypeStruct((b_pad, n_class), jnp.float32),
        grid_spec=pltpu.PrefetchScalarGridSpec(
            num_scalar_prefetch=0,
            grid=grid,
            in_specs=in_specs,
            out_specs=out_spec,
        ),
        compiler_params=pltpu.CompilerParams(
            dimension_semantics=("parallel",),      # shards batch tiles across v7x's 2 TCs
            vmem_limit_bytes=vmem_limit,
        ),
        cost_estimate=cost,
    )(xp, *conv_w_r, *conv_b_r, lin_w_bf, lin_b_f)
    return out[:batch]


def seq_cnn_reference(tokens, emb_table, conv_ws, conv_bs, lin_w, lin_b, filter_sizes):
    """Pure-JAX f32 reference matching the PyTorch forward semantics."""
    x = jnp.transpose(jnp.take(emb_table, tokens, axis=0), (1, 0, 2))  # (B, S, E)
    B, S, E = x.shape
    feats = []
    for i, fh in enumerate(filter_sizes):
        pad = fh - 1
        xp = jnp.pad(x, ((0, 0), (pad, pad), (0, 0)))
        out_len = S + fh - 1
        w = conv_ws[i]                                     # (fh, E, oc)
        acc = jnp.zeros((B, out_len, w.shape[2]), jnp.float32)
        for dh in range(fh):
            acc = acc + jnp.einsum('ble,eo->blo', xp[:, dh:dh + out_len, :], w[dh],
                                   precision='highest')
        acc = jnp.maximum(acc + conv_bs[i][None], 0.0)     # bias + ReLU
        pooled = jnp.max(acc, axis=1)                      # max over time -> (B, oc)
        pooled = pooled / jnp.sqrt(1.0 + pooled * pooled)  # LRN(1, 1, 0.5, 1)
        feats.append(pooled)
    feat = jnp.concatenate(feats, axis=1)
    return feat @ lin_w + lin_b                            # dropout == identity (eval)


if __name__ == "__main__":
    # Small shapes consistent with the module.
    vocab, E, seq, batch = 20, 32, 8, 2
    out_ch, n_class = 8, 4
    filter_sizes = (2, 3, 4)

    key = jax.random.PRNGKey(0)
    ks = jax.random.split(key, 3 + 2 * len(filter_sizes))

    emb_table = (jax.random.normal(ks[0], (vocab, E), jnp.float32) * 0.5)
    tokens = jax.random.randint(ks[1], (seq, batch), 0, vocab)  # (seq_len, batch)

    conv_ws, conv_bs = [], []
    for i, fh in enumerate(filter_sizes):
        conv_ws.append(jax.random.normal(ks[2 + 2 * i], (fh, E, out_ch), jnp.float32) * 0.1)
        conv_bs.append(jax.random.normal(ks[3 + 2 * i], (1, out_ch), jnp.float32) * 0.1)
    lin_w = jax.random.normal(ks[-1], (out_ch * len(filter_sizes), n_class), jnp.float32) * 0.1
    lin_b = jnp.linspace(-0.1, 0.1, n_class, dtype=jnp.float32).reshape(1, n_class)

    out = seq_cnn_forward(tokens, emb_table, conv_ws, conv_bs, lin_w, lin_b, filter_sizes)
    out = jax.block_until_ready(out)

    ref = seq_cnn_reference(tokens, emb_table, conv_ws, conv_bs, lin_w, lin_b, filter_sizes)
    assert out.shape == (batch, n_class)
    # Kernel uses bf16 MXU inputs with f32 accumulation; tolerance reflects that.
    assert jnp.allclose(out, ref, atol=2e-2, rtol=2e-2), (out, ref)

    print("KERNEL_OK")
</pallas_src>

<mosaic_0001>
module attributes {stable_mosaic.version = 11 : i64} {
  func.func @kernel(%arg0: i32, %arg1: memref<2x14x32xbf16, #tpu.memory_space<vmem>>, %arg2: memref<64x8xbf16, #tpu.memory_space<vmem>>, %arg3: memref<96x8xbf16, #tpu.memory_space<vmem>>, %arg4: memref<128x8xbf16, #tpu.memory_space<vmem>>, %arg5: memref<1x8xf32, #tpu.memory_space<vmem>>, %arg6: memref<1x8xf32, #tpu.memory_space<vmem>>, %arg7: memref<1x8xf32, #tpu.memory_space<vmem>>, %arg8: memref<24x4xbf16, #tpu.memory_space<vmem>>, %arg9: memref<1x4xf32, #tpu.memory_space<vmem>>, %arg10: memref<2x4xf32, #tpu.memory_space<vmem>>) attributes {dimension_semantics = [#tpu.dimension_semantics<parallel>], iteration_bounds = array<i64: 1>, scalar_prefetch = 0 : i64, scratch_operands = 0 : i64, tpu.core_type = #tpu.core_type<tc>, window_params = [{transform_indices = @transform_0, window_bounds = array<i64: 2, 14, 32>}, {pipeline_mode = #tpu.pipeline_mode<synchronous>, transform_indices = @transform_1, window_bounds = array<i64: 64, 8>}, {pipeline_mode = #tpu.pipeline_mode<synchronous>, transform_indices = @transform_2, window_bounds = array<i64: 96, 8>}, {pipeline_mode = #tpu.pipeline_mode<synchronous>, transform_indices = @transform_3, window_bounds = array<i64: 128, 8>}, {pipeline_mode = #tpu.pipeline_mode<synchronous>, transform_indices = @transform_4, window_bounds = array<i64: 1, 8>}, {pipeline_mode = #tpu.pipeline_mode<synchronous>, transform_indices = @transform_5, window_bounds = array<i64: 1, 8>}, {pipeline_mode = #tpu.pipeline_mode<synchronous>, transform_indices = @transform_6, window_bounds = array<i64: 1, 8>}, {pipeline_mode = #tpu.pipeline_mode<synchronous>, transform_indices = @transform_7, window_bounds = array<i64: 24, 4>}, {pipeline_mode = #tpu.pipeline_mode<synchronous>, transform_indices = @transform_8, window_bounds = array<i64: 1, 4>}, {transform_indices = @transform_9, window_bounds = array<i64: 2, 4>}]} {
    %c0 = arith.constant 0 : index
    %c0_0 = arith.constant 0 : index
    %c0_1 = arith.constant 0 : index
    %0 = vector.load %arg1[%c0, %c0_0, %c0_1] : memref<2x14x32xbf16, #tpu.memory_space<vmem>>, vector<1x14x32xbf16>
    %1 = vector.shape_cast %0 : vector<1x14x32xbf16> to vector<14x32xbf16>
    %c1 = arith.constant 1 : index
    %c0_2 = arith.constant 0 : index
    %c0_3 = arith.constant 0 : index
    %2 = vector.load %arg1[%c1, %c0_2, %c0_3] : memref<2x14x32xbf16, #tpu.memory_space<vmem>>, vector<1x14x32xbf16>
    %3 = vector.shape_cast %2 : vector<1x14x32xbf16> to vector<14x32xbf16>
    %4 = vector.extract_strided_slice %1 {offsets = [2, 0], sizes = [9, 32], strides = [1, 1]} : vector<14x32xbf16> to vector<9x32xbf16>
    %5 = vector.extract_strided_slice %1 {offsets = [3, 0], sizes = [9, 32], strides = [1, 1]} : vector<14x32xbf16> to vector<9x32xbf16>
    %6 = tpu.concatenate %4, %5 in 1 : vector<9x32xbf16>, vector<9x32xbf16> -> vector<9x64xbf16>
    %7 = vector.extract_strided_slice %3 {offsets = [2, 0], sizes = [9, 32], strides = [1, 1]} : vector<14x32xbf16> to vector<9x32xbf16>
    %8 = vector.extract_strided_slice %3 {offsets = [3, 0], sizes = [9, 32], strides = [1, 1]} : vector<14x32xbf16> to vector<9x32xbf16>
    %9 = tpu.concatenate %7, %8 in 1 : vector<9x32xbf16>, vector<9x32xbf16> -> vector<9x64xbf16>
    %10 = tpu.concatenate %6, %9 in 0 : vector<9x64xbf16>, vector<9x64xbf16> -> vector<18x64xbf16>
    %c0_4 = arith.constant 0 : index
    %c0_5 = arith.constant 0 : index
    %11 = vector.load %arg2[%c0_4, %c0_5] : memref<64x8xbf16, #tpu.memory_space<vmem>>, vector<64x8xbf16>
    %cst = arith.constant dense<0.000000e+00> : vector<18x8xf32>
    %12 = tpu.matmul %10, %11, %cst {dimension_numbers = #tpu.dot_dimension_numbers<[1], [0], [0], [1], [0, 0, 1, 1], [], []>} : vector<18x64xbf16>, vector<64x8xbf16>, vector<18x8xf32> -> vector<18x8xf32>
    %13 = vector.extract_strided_slice %12 {offsets = [0, 0], sizes = [9, 8], strides = [1, 1]} : vector<18x8xf32> to vector<9x8xf32>
    %cst_6 = arith.constant dense<0xFF800000> : vector<8xf32>
    %14 = vector.multi_reduction <maximumf>, %13, %cst_6 [0] : vector<9x8xf32> to vector<8xf32>
    %15 = vector.shape_cast %14 : vector<8xf32> to vector<1x8xf32>
    %16 = vector.extract_strided_slice %12 {offsets = [9, 0], sizes = [9, 8], strides = [1, 1]} : vector<18x8xf32> to vector<9x8xf32>
    %cst_7 = arith.constant dense<0xFF800000> : vector<8xf32>
    %17 = vector.multi_reduction <maximumf>, %16, %cst_7 [0] : vector<9x8xf32> to vector<8xf32>
    %18 = vector.shape_cast %17 : vector<8xf32> to vector<1x8xf32>
    %19 = tpu.concatenate %15, %18 in 0 : vector<1x8xf32>, vector<1x8xf32> -> vector<2x8xf32>
    %c0_8 = arith.constant 0 : index
    %c0_9 = arith.constant 0 : index
    %20 = vector.load %arg5[%c0_8, %c0_9] : memref<1x8xf32, #tpu.memory_space<vmem>>, vector<1x8xf32>
    %21 = vector.broadcast %20 : vector<1x8xf32> to vector<2x8xf32>
    %22 = arith.addf %19, %21 : vector<2x8xf32>
    %cst_10 = arith.constant 0.000000e+00 : f32
    %23 = vector.broadcast %cst_10 : f32 to vector<2x8xf32>
    %24 = arith.maximumf %22, %23 : vector<2x8xf32>
    %25 = arith.mulf %24, %24 : vector<2x8xf32>
    %cst_11 = arith.constant 1.000000e+00 : f32
    %26 = vector.broadcast %cst_11 : f32 to vector<2x8xf32>
    %27 = arith.addf %26, %25 : vector<2x8xf32>
    %28 = math.rsqrt %27 : vector<2x8xf32>
    %29 = arith.mulf %24, %28 : vector<2x8xf32>
    %30 = vector.extract_strided_slice %1 {offsets = [1, 0], sizes = [10, 32], strides = [1, 1]} : vector<14x32xbf16> to vector<10x32xbf16>
    %31 = vector.extract_strided_slice %1 {offsets = [2, 0], sizes = [10, 32], strides = [1, 1]} : vector<14x32xbf16> to vector<10x32xbf16>
    %32 = vector.extract_strided_slice %1 {offsets = [3, 0], sizes = [10, 32], strides = [1, 1]} : vector<14x32xbf16> to vector<10x32xbf16>
    %33 = tpu.concatenate %30, %31, %32 in 1 : vector<10x32xbf16>, vector<10x32xbf16>, vector<10x32xbf16> -> vector<10x96xbf16>
    %34 = vector.extract_strided_slice %3 {offsets = [1, 0], sizes = [10, 32], strides = [1, 1]} : vector<14x32xbf16> to vector<10x32xbf16>
    %35 = vector.extract_strided_slice %3 {offsets = [2, 0], sizes = [10, 32], strides = [1, 1]} : vector<14x32xbf16> to vector<10x32xbf16>
    %36 = vector.extract_strided_slice %3 {offsets = [3, 0], sizes = [10, 32], strides = [1, 1]} : vector<14x32xbf16> to vector<10x32xbf16>
    %37 = tpu.concatenate %34, %35, %36 in 1 : vector<10x32xbf16>, vector<10x32xbf16>, vector<10x32xbf16> -> vector<10x96xbf16>
    %38 = tpu.concatenate %33, %37 in 0 : vector<10x96xbf16>, vector<10x96xbf16> -> vector<20x96xbf16>
    %c0_12 = arith.constant 0 : index
    %c0_13 = arith.constant 0 : index
    %39 = vector.load %arg3[%c0_12, %c0_13] : memref<96x8xbf16, #tpu.memory_space<vmem>>, vector<96x8xbf16>
    %cst_14 = arith.constant dense<0.000000e+00> : vector<20x8xf32>
    %40 = tpu.matmul %38, %39, %cst_14 {dimension_numbers = #tpu.dot_dimension_numbers<[1], [0], [0], [1], [0, 0, 1, 1], [], []>} : vector<20x96xbf16>, vector<96x8xbf16>, vector<20x8xf32> -> vector<20x8xf32>
    %41 = vector.extract_strided_slice %40 {offsets = [0, 0], sizes = [10, 8], strides = [1, 1]} : vector<20x8xf32> to vector<10x8xf32>
    %cst_15 = arith.constant dense<0xFF800000> : vector<8xf32>
    %42 = vector.multi_reduction <maximumf>, %41, %cst_15 [0] : vector<10x8xf32> to vector<8xf32>
    %43 = vector.shape_cast %42 : vector<8xf32> to vector<1x8xf32>
    %44 = vector.extract_strided_slice %40 {offsets = [10, 0], sizes = [10, 8], strides = [1, 1]} : vector<20x8xf32> to vector<10x8xf32>
    %cst_16 = arith.constant dense<0xFF800000> : vector<8xf32>
    %45 = vector.multi_reduction <maximumf>, %44, %cst_16 [0] : vector<10x8xf32> to vector<8xf32>
    %46 = vector.shape_cast %45 : vector<8xf32> to vector<1x8xf32>
    %47 = tpu.concatenate %43, %46 in 0 : vector<1x8xf32>, vector<1x8xf32> -> vector<2x8xf32>
    %c0_17 = arith.constant 0 : index
    %c0_18 = arith.constant 0 : index
    %48 = vector.load %arg6[%c0_17, %c0_18] : memref<1x8xf32, #tpu.memory_space<vmem>>, vector<1x8xf32>
    %49 = vector.broadcast %48 : vector<1x8xf32> to vector<2x8xf32>
    %50 = arith.addf %47, %49 : vector<2x8xf32>
    %cst_19 = arith.constant 0.000000e+00 : f32
    %51 = vector.broadcast %cst_19 : f32 to vector<2x8xf32>
    %52 = arith.maximumf %50, %51 : vector<2x8xf32>
    %53 = arith.mulf %52, %52 : vector<2x8xf32>
    %cst_20 = arith.constant 1.000000e+00 : f32
    %54 = vector.broadcast %cst_20 : f32 to vector<2x8xf32>
    %55 = arith.addf %54, %53 : vector<2x8xf32>
    %56 = math.rsqrt %55 : vector<2x8xf32>
    %57 = arith.mulf %52, %56 : vector<2x8xf32>
    %58 = vector.extract_strided_slice %1 {offsets = [0, 0], sizes = [11, 32], strides = [1, 1]} : vector<14x32xbf16> to vector<11x32xbf16>
    %59 = vector.extract_strided_slice %1 {offsets = [1, 0], sizes = [11, 32], strides = [1, 1]} : vector<14x32xbf16> to vector<11x32xbf16>
    %60 = vector.extract_strided_slice %1 {offsets = [2, 0], sizes = [11, 32], strides = [1, 1]} : vector<14x32xbf16> to vector<11x32xbf16>
    %61 = vector.extract_strided_slice %1 {offsets = [3, 0], sizes = [11, 32], strides = [1, 1]} : vector<14x32xbf16> to vector<11x32xbf16>
    %62 = tpu.concatenate %58, %59, %60, %61 in 1 : vector<11x32xbf16>, vector<11x32xbf16>, vector<11x32xbf16>, vector<11x32xbf16> -> vector<11x128xbf16>
    %63 = vector.extract_strided_slice %3 {offsets = [0, 0], sizes = [11, 32], strides = [1, 1]} : vector<14x32xbf16> to vector<11x32xbf16>
    %64 = vector.extract_strided_slice %3 {offsets = [1, 0], sizes = [11, 32], strides = [1, 1]} : vector<14x32xbf16> to vector<11x32xbf16>
    %65 = vector.extract_strided_slice %3 {offsets = [2, 0], sizes = [11, 32], strides = [1, 1]} : vector<14x32xbf16> to vector<11x32xbf16>
    %66 = vector.extract_strided_slice %3 {offsets = [3, 0], sizes = [11, 32], strides = [1, 1]} : vector<14x32xbf16> to vector<11x32xbf16>
    %67 = tpu.concatenate %63, %64, %65, %66 in 1 : vector<11x32xbf16>, vector<11x32xbf16>, vector<11x32xbf16>, vector<11x32xbf16> -> vector<11x128xbf16>
    %68 = tpu.concatenate %62, %67 in 0 : vector<11x128xbf16>, vector<11x128xbf16> -> vector<22x128xbf16>
    %c0_21 = arith.constant 0 : index
    %c0_22 = arith.constant 0 : index
    %69 = vector.load %arg4[%c0_21, %c0_22] : memref<128x8xbf16, #tpu.memory_space<vmem>>, vector<128x8xbf16>
    %cst_23 = arith.constant dense<0.000000e+00> : vector<22x8xf32>
    %70 = tpu.matmul %68, %69, %cst_23 {dimension_numbers = #tpu.dot_dimension_numbers<[1], [0], [0], [1], [0, 0, 1, 1], [], []>} : vector<22x128xbf16>, vector<128x8xbf16>, vector<22x8xf32> -> vector<22x8xf32>
    %71 = vector.extract_strided_slice %70 {offsets = [0, 0], sizes = [11, 8], strides = [1, 1]} : vector<22x8xf32> to vector<11x8xf32>
    %cst_24 = arith.constant dense<0xFF800000> : vector<8xf32>
    %72 = vector.multi_reduction <maximumf>, %71, %cst_24 [0] : vector<11x8xf32> to vector<8xf32>
    %73 = vector.shape_cast %72 : vector<8xf32> to vector<1x8xf32>
    %74 = vector.extract_strided_slice %70 {offsets = [11, 0], sizes = [11, 8], strides = [1, 1]} : vector<22x8xf32> to vector<11x8xf32>
    %cst_25 = arith.constant dense<0xFF800000> : vector<8xf32>
    %75 = vector.multi_reduction <maximumf>, %74, %cst_25 [0] : vector<11x8xf32> to vector<8xf32>
    %76 = vector.shape_cast %75 : vector<8xf32> to vector<1x8xf32>
    %77 = tpu.concatenate %73, %76 in 0 : vector<1x8xf32>, vector<1x8xf32> -> vector<2x8xf32>
    %c0_26 = arith.constant 0 : index
    %c0_27 = arith.constant 0 : index
    %78 = vector.load %arg7[%c0_26, %c0_27] : memref<1x8xf32, #tpu.memory_space<vmem>>, vector<1x8xf32>
    %79 = vector.broadcast %78 : vector<1x8xf32> to vector<2x8xf32>
    %80 = arith.addf %77, %79 : vector<2x8xf32>
    %cst_28 = arith.constant 0.000000e+00 : f32
    %81 = vector.broadcast %cst_28 : f32 to vector<2x8xf32>
    %82 = arith.maximumf %80, %81 : vector<2x8xf32>
    %83 = arith.mulf %82, %82 : vector<2x8xf32>
    %cst_29 = arith.constant 1.000000e+00 : f32
    %84 = vector.broadcast %cst_29 : f32 to vector<2x8xf32>
    %85 = arith.addf %84, %83 : vector<2x8xf32>
    %86 = math.rsqrt %85 : vector<2x8xf32>
    %87 = arith.mulf %82, %86 : vector<2x8xf32>
    %88 = tpu.concatenate %29, %57, %87 in 1 : vector<2x8xf32>, vector<2x8xf32>, vector<2x8xf32> -> vector<2x24xf32>
    %89 = arith.truncf %88 : vector<2x24xf32> to vector<2x24xbf16>
    %c0_30 = arith.constant 0 : index
    %c0_31 = arith.constant 0 : index
    %90 = vector.load %arg8[%c0_30, %c0_31] : memref<24x4xbf16, #tpu.memory_space<vmem>>, vector<24x4xbf16>
    %cst_32 = arith.constant dense<0.000000e+00> : vector<2x4xf32>
    %91 = tpu.matmul %89, %90, %cst_32 {dimension_numbers = #tpu.dot_dimension_numbers<[1], [0], [0], [1], [0, 0, 1, 1], [], []>} : vector<2x24xbf16>, vector<24x4xbf16>, vector<2x4xf32> -> vector<2x4xf32>
    %c0_33 = arith.constant 0 : index
    %c0_34 = arith.constant 0 : index
    %92 = vector.load %arg9[%c0_33, %c0_34] : memref<1x4xf32, #tpu.memory_space<vmem>>, vector<1x4xf32>
    %93 = vector.broadcast %92 : vector<1x4xf32> to vector<2x4xf32>
    %94 = arith.addf %91, %93 : vector<2x4xf32>
    %c0_35 = arith.constant 0 : index
    %c0_36 = arith.constant 0 : index
    %95 = vector.load %arg10[%c0_35, %c0_36] : memref<2x4xf32, #tpu.memory_space<vmem>>, vector<2x4xf32>
    tpu.vector_store %arg10[%c0_35, %c0_36], %94 {strides = array<i32>} : memref<2x4xf32, #tpu.memory_space<vmem>>, vector<2x4xf32>,
    return
  }
  func.func @transform_0(%arg0: i32) -> (i32, i32, i32) {
    %c0_i32 = arith.constant 0 : i32
    %c0_i32_0 = arith.constant 0 : i32
    %c0_i32_1 = arith.constant 0 : i32
    return %arg0, %c0_i32, %c0_i32_0 : i32, i32, i32
  }
  func.func @transform_1(%arg0: i32) -> (i32, i32) {
    %c0_i32 = arith.constant 0 : i32
    %c0_i32_0 = arith.constant 0 : i32
    %c0_i32_1 = arith.constant 0 : i32
    return %c0_i32, %c0_i32_0 : i32, i32
  }
  func.func @transform_2(%arg0: i32) -> (i32, i32) {
    %c0_i32 = arith.constant 0 : i32
    %c0_i32_0 = arith.constant 0 : i32
    %c0_i32_1 = arith.constant 0 : i32
    return %c0_i32, %c0_i32_0 : i32, i32
  }
  func.func @transform_3(%arg0: i32) -> (i32, i32) {
    %c0_i32 = arith.constant 0 : i32
    %c0_i32_0 = arith.constant 0 : i32
    %c0_i32_1 = arith.constant 0 : i32
    return %c0_i32, %c0_i32_0 : i32, i32
  }
  func.func @transform_4(%arg0: i32) -> (i32, i32) {
    %c0_i32 = arith.constant 0 : i32
    %c0_i32_0 = arith.constant 0 : i32
    %c0_i32_1 = arith.constant 0 : i32
    return %c0_i32, %c0_i32_0 : i32, i32
  }
  func.func @transform_5(%arg0: i32) -> (i32, i32) {
    %c0_i32 = arith.constant 0 : i32
    %c0_i32_0 = arith.constant 0 : i32
    %c0_i32_1 = arith.constant 0 : i32
    return %c0_i32, %c0_i32_0 : i32, i32
  }
  func.func @transform_6(%arg0: i32) -> (i32, i32) {
    %c0_i32 = arith.constant 0 : i32
    %c0_i32_0 = arith.constant 0 : i32
    %c0_i32_1 = arith.constant 0 : i32
    return %c0_i32, %c0_i32_0 : i32, i32
  }
  func.func @transform_7(%arg0: i32) -> (i32, i32) {
    %c0_i32 = arith.constant 0 : i32
    %c0_i32_0 = arith.constant 0 : i32
    %c0_i32_1 = arith.constant 0 : i32
    return %c0_i32, %c0_i32_0 : i32, i32
  }
  func.func @transform_8(%arg0: i32) -> (i32, i32) {
    %c0_i32 = arith.constant 0 : i32
    %c0_i32_0 = arith.constant 0 : i32
    %c0_i32_1 = arith.constant 0 : i32
    return %c0_i32, %c0_i32_0 : i32, i32
  }
  func.func @transform_9(%arg0: i32) -> (i32, i32) {
    %c0_i32 = arith.constant 0 : i32
    %c0_i32_0 = arith.constant 0 : i32
    return %arg0, %c0_i32 : i32, i32
  }
}

</mosaic_0001>

<bundles_post_ra>
// kernel: tpu_custom_call.1
= control target key start
LH: loop header
LB: loop body
LE: loop exit
PB: predicated region body
PF: predicated region fallthrough
CT: control target
= control target key end

     0   :  { %s696_s26 = smov 64   ;;  %s871_s0 = inlined_call_operand.vmem [shape: bf16[2,14,32], index: 0, kind: input, shape index: {}]   ;;  %s872_s1 = inlined_call_operand.vmem [shape: bf16[64,8], index: 1, kind: input, shape index: {}]   ;;  %s873_s2 = inlined_call_operand.vmem [shape: bf16[96,8], index: 2, kind: input, shape index: {}]   ;;  %s874_s3 = inlined_call_operand.vmem [shape: bf16[128,8], index: 3, kind: input, shape index: {}]   ;;  %s875_s4 = inlined_call_operand.vmem [shape: f32[1,8], index: 4, kind: input, shape index: {}]   ;;  %s876_s5 = inlined_call_operand.vmem [shape: f32[1,8], index: 5, kind: input, shape index: {}]   ;;  %s877_s6 = inlined_call_operand.vmem [shape: f32[1,8], index: 6, kind: input, shape index: {}]   ;;  %s878_s7 = inlined_call_operand.vmem [shape: bf16[24,4], index: 7, kind: input, shape index: {}]   ;;  %s879_s8 = inlined_call_operand.vmem [shape: f32[1,4], index: 8, kind: input, shape index: {}]   ;;  %s880_s9 = inlined_call_operand.hbm [shape: f32[2,4], index: 9, kind: output, shape index: {}]  }
   0x1   :  { %v550_v0 = vld [vmem:[%s871_s0 + $0x8] sm:$0xf]  ;;  %v634_v1 = vld [vmem:[%s871_s0 + $0x8] sm:$0x70]  ;;  %v546_v3 = vld [vmem:[%s871_s0] sm:$0xf] }
   0x2   :  { %v758_v2 = vor.u32 %v634_v1, %v550_v0  ;;  %v633_v4 = vld [vmem:[%s871_s0] sm:$0x70]  ;;  %v652_v5 = vld [vmem:[%s874_s3 + $0x38] sm:$0xff]  ;;  %v644_v7 = vld [vmem:[%s873_s2 + $0x28] sm:$0xff] }
   0x3   :  { %v769_v6 = vor.u32 %v633_v4, %v546_v3  ;;  %416 = vmatpush.bf16.msra.mxu2 %v652_v5  ;;  %v651_v10 = vld [vmem:[%s874_s3 + $0x30] sm:$0xff]  ;;  %v638_v11 = vld [vmem:[%s872_s1 + $0x18] sm:$0xff]  ;;  %269 = vmatpush.bf16.msra.mxu1 %v644_v7  ;;  %v643_v15 = vld [vmem:[%s873_s2 + $0x20] sm:$0xff] }
   0x4   :  { %v62_v8 = vshrl.u32 %v758_v2, 16  ;;  %v64_v9 = vshll.u32 %v758_v2, 16  ;;  %130 = vmatpush.bf16.msra.mxu0 %v638_v11  ;;  %v650_v23 = vld [vmem:[%s874_s3 + $0x28] sm:$0xff] }
   0x5   :  { %v45_v12 = vshrl.u32 %v769_v6, 16  ;;  %v47_v13 = vshll.u32 %v769_v6, 16  ;;  %v187_v14 = vrot.slane %v769_v6, 1 }
   0x6   :  { %v333_v16 = vrot.slane %v62_v8, 1  ;;  %v334_v17 = vrot.slane %v64_v9, 2  ;;  %v66_v18 = vrot.slane %v64_v9, 1 }
   0x7   :  { %188 = vrot.lane.b32.xlu2 %v187_v14, %s696_s26  ;;  %v325_v19 = vrot.slane %v45_v12, 1  ;;  %v326_v20 = vrot.slane %v47_v13, 2  ;;  %417 = vmatpush.bf16.msra.mxu2 %v651_v10 }
   0x8   :  { %v335_v21 = vor.u32 %v334_v17, %v333_v16  ;;  %v67_v22 = vor.u32 %v66_v18, %v62_v8 }
   0x9   :  { %14 = vsyncpa [#allocation3], 0  ;;  %270 = vmatpush.bf16.msra.mxu1 %v643_v15  ;;  %s697_s29 = smov 96   ;;  %s698_s30 = smov 32   ;;  %v49_v24 = vrot.slane %v47_v13, 1  ;;  %v327_v25 = vor.u32 %v326_v20, %v325_v19  ;;  %v649_v26 = vld [vmem:[%s874_s3 + $0x20] sm:$0xff] }
   0xa   :  { %336 = vrot.lane.b32.xlu1 %v335_v21, %s697_s29  ;;  %68 = vrot.lane.b32.xlu0 %v67_v22, %s698_s30  ;;  %v192_v27 = vrot.slane %v758_v2, 1  ;;  %v637_v29 = vld [vmem:[%s872_s1 + $0x10] sm:$0xff]  ;;  %v642_v30 = vld [vmem:[%s873_s2 + $0x18] sm:$0xff]  ;;  %vm53_vm0 = vcmask 261120   ;;  %vm119_vm1 = vcmask 523264   ;;  %vm83_vm2 = vcmask 1044480  }
   0xb   :  { %418 = vmatpush.bf16.msra.mxu2 %v650_v23  ;;  %v50_v28 = vor.u32 %v49_v24, %v45_v12  ;;  %v648_v31 = vld [vmem:[%s874_s3 + $0x18] sm:$0xff]  ;;  %131 = vmatpush.bf16.msra.mxu0 %v637_v29  ;;  %v636_v32 = vld [vmem:[%s872_s1 + $0x8] sm:$0xff]  ;;  %v641_v33 = vld [vmem:[%s873_s2 + $0x10] sm:$0xff]  ;;  %vm84_vm3 = vsmask.f32 4352  ;;  %vm262_vm4 = vcmask 785408  }
   0xc   :  { %v647_v34 = vld [vmem:[%s874_s3 + $0x10] sm:$0xff]  ;;  %v635_v35 = vld [vmem:[%s872_s1] sm:$0xff]  ;;  %v640_v36 = vld [vmem:[%s873_s2 + $0x8] sm:$0xff]  ;;  %vm348_vm6 = vcmask 1045504   ;;  %vm349_vm7 = vsmask.f32 5376 }
   0xd   :  { %271 = vmatpush.bf16.msra.mxu1 %v642_v30  ;;  %v646_v37 = vld [vmem:[%s874_s3 + $0x8] sm:$0xff]  ;;  %v639_v38 = vld [vmem:[%s873_s2] sm:$0xff]  ;;  %vm85_vm5 = vmand %vm83_vm2, %vm84_vm3  ;;  %vm144_vm9 = vcmask 64512   ;;  %vm146_vm10 = vcmask 57344   ;;  %vm157_vm11 = vcmask 58368   ;;  %vm155_vm12 = vcmask 64513  }
   0xe   :  { %v645_v39 = vld [vmem:[%s874_s3] sm:$0xff]  ;;  %vm350_vm8 = vmand %vm348_vm6, %vm349_vm7  ;;  %vm435_vm13 = vcmask 59392   ;;  %vm294_vm14 = vcmask 64514   ;;  %vm296_vm15 = vcmask 60416   ;;  %s701_s19 = smov [#allocation2]   ;;  %s533_s0 = sshll.u32 %s880_s9, 4  ;;  %s534_s0 = int_to_ptr.hbm [resolvable:$true] %s533_s0 }
   0xf   :  { %328 = vrot.lane.b32.xlu2 %v327_v25, %s697_s29  ;;  %419 = vmatpush.bf16.msra.mxu2 %v649_v26  ;;  %s531_s20 = sshll.u32 %s701_s19, 4  ;;  %s532_s20 = int_to_ptr.vmem [resolvable:$true] %s531_s20 }
  0x10   :  { %132 = vmatpush.bf16.msra.mxu0 %v636_v32 }
  0x11   :  { %272 = vmatpush.bf16.msra.mxu1 %v641_v33 }
  0x12   :  { %193 = vrot.lane.b32.xlu0 %v192_v27, %s696_s26  ;;  %51 = vrot.lane.b32.xlu1 %v50_v28, %s698_s30 }
  0x13   :  { %420 = vmatpush.bf16.msra.mxu2 %v648_v31 }
  0x14   :  { %133 = vmatpush.bf16.msra.mxu0 %v635_v35 }
  0x15   :  { %273 = vmatpush.bf16.msra.mxu1 %v640_v36 }
  0x17   :  { %421 = vmatpush.bf16.msra.mxu2 %v647_v34 }
  0x19   :  { %274 = vmatpush.bf16.msra.mxu1 %v639_v38 }
  0x1b   :  { %422 = vmatpush.bf16.msra.mxu2 %v646_v37 }
  0x1f   :  { %423 = vmatpush.bf16.msra.mxu2 %v645_v39 }
  0x61   :  { %v189_v47 = vpop.permute.xlu2 %188 }
  0x69   :  { %v329_v4 = vpop.permute.xlu2 %328 }
  0x7c   :  { %v337_v40 = vpop.permute.xlu1 %336  ;;  %v69_v41 = vpop.permute.xlu0 %68 }
  0x7d   :  { %v71_v42 = vsel %vm53_vm0, %v758_v2, %v69_v41 }
  0x7e   :  { %v75_v43 = vshrl.u32 %v71_v42, 16  ;;  %v78_v44 = vshll.u32 %v71_v42, 16 }
  0x80   :  { %v77_v45 = vrot.slane %v75_v43, 4  ;;  %v80_v46 = vrot.slane %v78_v44, 5 }
  0x82   :  { %v81_v52 = vor.u32 %v80_v46, %v77_v45 }
  0x84   :  { %v194_v48 = vpop.permute.xlu0 %193  ;;  %v52_v49 = vpop.permute.xlu1 %51 }
  0x85   :  { %v196_v50 = vsel %vm119_vm1, %v71_v42, %v194_v48  ;;  %v55_v51 = vsel %vm53_vm0, %v769_v6, %v52_v49  ;;  %vm444_vm0 = vcmask 64515  }
  0x86   :  { %v203_v53 = vshrl.u32 %v196_v50, 16  ;;  %v206_v54 = vshll.u32 %v196_v50, 16  ;;  %v73_v55 = vrot.slane %v55_v51, 1  ;;  %v191_v56 = vsel %vm119_vm1, %v55_v51, %v189_v47 }
  0x87   :  { %v199_v57 = vshll.u32 %v191_v56, 16  ;;  %v339_v58 = vsel %vm262_vm4, %v196_v50, %v337_v40  ;;  %v197_v63 = vshrl.u32 %v191_v56, 16  ;;  %v331_v9 = vsel %vm262_vm4, %v191_v56, %v329_v4 }
  0x88   :  { %v205_v59 = vrot.slane %v203_v53, 3  ;;  %v208_v60 = vrot.slane %v206_v54, 4  ;;  %v86_v61 = vsel %vm85_vm5, %v73_v55, %v81_v52  ;;  %v340_v62 = vshrl.u32 %v339_v58, 16 }
  0x89   :  { %v201_v0 = vrot.slane %v199_v57, 1  ;;  %568 = vmatmul.msk.bf16.vlgmr.msra.gmra.mxu0 %vm119_vm1, %v86_v61  ;;  %v343_v1 = vshll.u32 %v339_v58, 16 }
  0x8a   :  { %v209_v2 = vor.u32 %v208_v60, %v205_v59  ;;  %v342_v3 = vrot.slane %v340_v62, 2 }
  0x8b   :  { %v202_v5 = vor.u32 %v201_v0, %v197_v63  ;;  %v345_v6 = vrot.slane %v343_v1, 3 }
  0x8d   :  { %v213_v7 = vsel %vm83_vm2, %v202_v5, %v209_v2  ;;  %v346_v8 = vor.u32 %v345_v6, %v342_v3  ;;  %vm166_vm2 = vcmask 1040384   ;;  %v660_v5 = vld [vmem:[%s876_s5] ss:$0 sm:$0xff]  ;;  %s699_s5 = smov 8  }
  0x8e   :  { %594 = vmatmul.msk.bf16.vlgmr.msra.gmra.mxu1 %vm262_vm4, %v213_v7 }
  0x8f   :  { %v351_v10 = vsel %vm350_vm8, %v331_v9, %v346_v8 }
  0x90   :  { %424 = vmatmul.bf16.vlgmr.msra.gmra.mxu2 %v351_v10 }
  0x99   :  { %569 = vmatmul.msk.bf16.gmra.mxu0 %vm119_vm1, %v81_v52  ;;  %vm446_vm1 = vcmask 62464  }
  0x9e   :  { %595 = vmatmul.msk.bf16.gmra.mxu1 %vm262_vm4, %v209_v2 }
  0xa0   :  { %429 = vmatmul.bf16.gmra.mxu2 %v346_v8 }
 0x106   :  { %v135_v11 = vpop.f32.mrf.mxu0 }
 0x107   :  { %v145_v14 = vsel %vm144_vm9, %v135_v11, -inf }
 0x10b   :  { %v276_v12 = vpop.f32.mrf.mxu1 }
 0x10c   :  { %v285_v20 = vsel %vm144_vm9, %v276_v12, -inf }
 0x10e   :  { %v137_v13 = vpop.f32.mrf.mxu0 }
 0x10f   :  { %v147_v15 = vsel %vm146_vm10, %v137_v13, -inf  ;;  %v156_v26 = vsel %vm155_vm12, %v137_v13, -inf  ;;  %vm507_vm10 = vcmask 1043456  }
 0x110   :  { %v148_v16 = vmax.f32 %v145_v14, %v147_v15 }
 0x112   :  { %v149_v17 = vrot.slane %v148_v16, 4 }
 0x113   :  { %v425_v18 = vpop.f32.mrf.mxu2  ;;  %v278_v19 = vpop.f32.mrf.mxu1 }
 0x114   :  { %v150_v21 = vmax.f32 %v148_v16, %v149_v17  ;;  %v286_v22 = vsel %vm157_vm11, %v278_v19, -inf  ;;  %v434_v35 = vsel %vm144_vm9, %v425_v18, -inf  ;;  %v295_v38 = vsel %vm294_vm14, %v278_v19, -inf  ;;  %v661_v16 = vld [vmem:[%s877_s6] ss:$0 sm:$0xff]  ;;  %s700_s6 = smov 16  }
 0x115   :  { %v287_v23 = vmax.f32 %v285_v20, %v286_v22  ;;  %vm484_vm14 = vcmask 130048  }
 0x116   :  { %v140_v24 = vpop.f32.mrf.mxu0  ;;  %v151_v25 = vrot.slane %v150_v21, 2 }
 0x117   :  { %v158_v27 = vsel %vm157_vm11, %v140_v24, -inf  ;;  %v288_v28 = vrot.slane %v287_v23, 4 }
 0x118   :  { %v159_v29 = vmax.f32 %v156_v26, %v158_v27  ;;  %v152_v32 = vmax.f32 %v150_v21, %v151_v25 }
 0x119   :  { %v289_v31 = vmax.f32 %v287_v23, %v288_v28 }
 0x11a   :  { %v160_v30 = vrot.slane %v159_v29, 4  ;;  %v153_v45 = vrot.slane %v152_v32, 1 }
 0x11b   :  { %v427_v33 = vpop.f32.mrf.mxu2  ;;  %v281_v34 = vpop.f32.mrf.mxu1  ;;  %v290_v42 = vrot.slane %v289_v31, 2 }
 0x11c   :  { %v161_v36 = vmax.f32 %v159_v29, %v160_v30  ;;  %v436_v37 = vsel %vm435_vm13, %v427_v33, -inf  ;;  %v297_v40 = vsel %vm296_vm15, %v281_v34, -inf  ;;  %v154_v53 = vmax.f32 %v152_v32, %v153_v45 }
 0x11d   :  { %v437_v39 = vmax.f32 %v434_v35, %v436_v37  ;;  %v298_v43 = vmax.f32 %v295_v38, %v297_v40  ;;  %v291_v51 = vmax.f32 %v289_v31, %v290_v42  ;;  %v445_v57 = vsel %vm444_vm0, %v427_v33, -inf  ;;  %v662_v42 = vld [vmem:[%s875_s4] ss:$0 sm:$0xff] }
 0x11e   :  { %v162_v41 = vrot.slane %v161_v36, 2  ;;  %v142_v44 = vpop.f32.mrf.mxu0  ;;  %vm503_vm15 = vcmask 195584   ;;  %vm524_vm0 = vcmask 25600  }
 0x11f   :  { %v438_v46 = vrot.slane %v437_v39, 4  ;;  %v299_v48 = vrot.slane %v298_v43, 4  ;;  %v292_v62 = vrot.slane %v291_v51, 1 }
 0x120   :  { %v163_v47 = vmax.f32 %v161_v36, %v162_v41 }
 0x121   :  { %v439_v49 = vmax.f32 %v437_v39, %v438_v46  ;;  %v300_v52 = vmax.f32 %v298_v43, %v299_v48  ;;  %v293_v6 = vmax.f32 %v291_v51, %v292_v62  ;;  %v489_v46 = vld [vmem:[%s878_s7 + $0x8] sm:$0xf]  ;;  %v653_v51 = vld [vmem:[%s878_s7] sm:$0xff] }
 0x122   :  { %v164_v50 = vrot.slane %v163_v47, 1 }
 0x123   :  { %v430_v54 = vpop.f32.mrf.mxu2  ;;  %v283_v55 = vpop.f32.mrf.mxu1  ;;  %v301_v58 = vrot.slane %v300_v52, 2  ;;  %v440_v60 = vrot.slane %v439_v49, 2 }
 0x124   :  { %v165_v56 = vmax.f32 %v163_v47, %v164_v50  ;;  %v447_v59 = vsel %vm446_vm1, %v430_v54, -inf  ;;  %v499_v47 = vunpack.c.l.b16 %v489_v46 }
 0x125   :  { %v448_v61 = vmax.f32 %v445_v57, %v447_v59  ;;  %v302_v63 = vmax.f32 %v300_v52, %v301_v58  ;;  %v441_v3 = vmax.f32 %v439_v49, %v440_v60 }
 0x126   :  { %v167_v0 = vsel %vm166_vm2, %v154_v53, %v165_v56  ;;  %v501_v49 = vpack.c.b16 %v499_v47, %v499_v47 }
 0x127   :  { %v449_v1 = vrot.slane %v448_v61, 4  ;;  %v303_v2 = vrot.slane %v302_v63, 1  ;;  %v442_v11 = vrot.slane %v441_v3, 1  ;;  %v172_v43 = vadd.f32 %v662_v42, %v167_v0 }
 0x128   :  { %v509_v50 = vsel %vm507_vm10, %v501_v49, 0 }
 0x129   :  { %v450_v4 = vmax.f32 %v448_v61, %v449_v1  ;;  %v304_v7 = vmax.f32 %v302_v63, %v303_v2  ;;  %v443_v17 = vmax.f32 %v441_v3, %v442_v11  ;;  %v173_v44 = vmax.f32 %v172_v43, 0.0  ;;  %517 = vmatpush.bf16.msra.mxu3 %v509_v50  ;;  %v663_v1 = vld [vmem:[%s879_s8] ss:$0 sm:$0xff] }
 0x12b   :  { %v451_v8 = vrot.slane %v450_v4, 2  ;;  %v432_v9 = vpop.f32.mrf.mxu2  ;;  %v305_v10 = vsel %vm166_vm2, %v293_v6, %v304_v7  ;;  %v174_v45 = vmul.f32 %v173_v44, %v173_v44 }
 0x12c   :  { %v310_v13 = vadd.f32 %v660_v5, %v305_v10 }
 0x12d   :  { %v452_v12 = vmax.f32 %v450_v4, %v451_v8  ;;  %v175_v48 = vadd.f32 1.0, %v174_v45  ;;  %518 = vmatpush.bf16.msra.mxu3 %v653_v51 }
 0x12e   :  { %v311_v15 = vmax.f32 %v310_v13, 0.0 }
 0x12f   :  { %v453_v14 = vrot.slane %v452_v12, 1  ;;  %vm182_vm12 = vweird.f32 %v175_v48 }
 0x130   :  { %v312_v19 = vmul.f32 %v311_v15, %v311_v15 }
 0x131   :  { %v454_v18 = vmax.f32 %v452_v12, %v453_v14 }
 0x132   :  { %v313_v20 = vadd.f32 1.0, %v312_v19 }
 0x133   :  { %v455_v21 = vsel %vm166_vm2, %v443_v17, %v454_v18 }
 0x134   :  { %v460_v22 = vadd.f32 %v661_v16, %v455_v21  ;;  %664 = vrsqrt.f32 %v313_v20  ;;  %vm320_vm4 = vweird.f32 %v313_v20 }
 0x136   :  { %v461_v23 = vmax.f32 %v460_v22, 0.0 }
 0x138   :  { %v462_v24 = vmul.f32 %v461_v23, %v461_v23 }
 0x13a   :  { %v463_v25 = vadd.f32 1.0, %v462_v24  ;;  %v665_v26 = vpop.eup %664 }
 0x13b   :  { %v315_v27 = vmul.f32 %v665_v26, %v313_v20  ;;  %vm321_vm3 = vweird.f32 %v665_v26 }
 0x13c   :  { %666 = vrsqrt.f32 %v463_v25  ;;  %vm322_vm5 = vmor %vm320_vm4, %vm321_vm3  ;;  %vm470_vm7 = vweird.f32 %v463_v25 }
 0x13d   :  { %v316_v28 = vmul.f32 %v665_v26, %v315_v27  ;;  %668 = vrsqrt.f32 %v175_v48 }
 0x13f   :  { %v317_v29 = vmul.f32 0.5, %v316_v28 }
 0x141   :  { %v318_v31 = vsub.f32 1.5, %v317_v29 }
 0x142   :  { %v667_v30 = vpop.eup %666 }
 0x143   :  { %v465_v32 = vmul.f32 %v667_v30, %v463_v25  ;;  %v319_v33 = vmul.f32 %v665_v26, %v318_v31  ;;  %vm471_vm6 = vweird.f32 %v667_v30  ;;  %v669_v52 = vpop.eup %668 }
 0x144   :  { %vm472_vm8 = vmor %vm470_vm7, %vm471_vm6  ;;  %v177_v53 = vmul.f32 %v669_v52, %v175_v48  ;;  %vm183_vm11 = vweird.f32 %v669_v52 }
 0x145   :  { %v466_v34 = vmul.f32 %v667_v30, %v465_v32  ;;  %v323_v35 = vsel %vm322_vm5, %v665_v26, %v319_v33  ;;  %vm184_vm13 = vmor %vm182_vm12, %vm183_vm11 }
 0x146   :  { %v324_v36 = vmul.f32 %v323_v35, %v311_v15  ;;  %v178_v54 = vmul.f32 %v669_v52, %v177_v53 }
 0x147   :  { %v467_v37 = vmul.f32 0.5, %v466_v34 }
 0x148   :  { %476 = vrot.lane.b32.xlu0 %v324_v36, %s699_s5  ;;  %v179_v55 = vmul.f32 0.5, %v178_v54 }
 0x149   :  { %v468_v38 = vsub.f32 1.5, %v467_v37 }
 0x14a   :  { %v180_v56 = vsub.f32 1.5, %v179_v55 }
 0x14b   :  { %v469_v39 = vmul.f32 %v667_v30, %v468_v38 }
 0x14c   :  { %v181_v57 = vmul.f32 %v669_v52, %v180_v56 }
 0x14d   :  { %v473_v40 = vsel %vm472_vm8, %v667_v30, %v469_v39 }
 0x14e   :  { %v474_v41 = vmul.f32 %v473_v40, %v461_v23  ;;  %v185_v58 = vsel %vm184_vm13, %v669_v52, %v181_v57 }
 0x14f   :  { %v186_v60 = vmul.f32 %v185_v58, %v173_v44 }
 0x150   :  { %480 = vrot.lane.b32.xlu1 %v474_v41, %s700_s6 }
 0x1ba   :  { %v477_v59 = vpop.permute.xlu0 %476 }
 0x1bb   :  { %v483_v61 = vsel %vm144_vm9, %v186_v60, %v477_v59 }
 0x1c2   :  { %v481_v62 = vpop.permute.xlu1 %480 }
 0x1c3   :  { %v485_v63 = vsel %vm484_vm14, %v483_v61, %v481_v62 }
 0x1c4   :  { %v486_v0 = vpack.c.bf16 %v485_v63, %v485_v63 }
 0x1c6   :  { %632 = vmatmul.msk.bf16.vlgmr.msra.gmra.mxu3 %vm503_vm15, %v486_v0 }
 0x249   :  { %v520_v2 = vpop.f32.mrf.mxu3 }
 0x24a   :  { %v521_v3 = vadd.f32 %v663_v1, %v520_v2 }
 0x24c   :  { %525 = vst.msk [vmem:[#allocation2] sm:$0x3] %vm524_vm0, %v521_v3 }
 0x24d   :  { %536 = dma.vmem_to_hbm [thread:$0]  %s532_s20, 32, %s534_s0, [#allocation3]  }
 0x251   :  { %v522_v4 = vpop.f32.mrf.mxu3 }
 0x252   :  { %694 = dma.done.wait [#allocation3], 32  }
 0x253   :  { %695 = vsyncadd [#allocation3], 4294967264 }
 0x254   :  { %541 = vsyncpa [#allocation3], 1 }

</bundles_post_ra>
